<compile_context>
chip_gen: v7x
topology: tpu7x:2x2x1
jax: 0.10.0
libtpu: 0.0.40
codegen_flags: <defaults>
</compile_context>

<pallas_src>
import jax
import jax.numpy as jnp
from jax.experimental import pallas as pl
from jax.experimental.pallas import tpu as pltpu

C_IN, C_MID, C_OUT = 4, 8, 4
K = 4
LANE = 128

# Bytes per in-flight buffer set (x block + A block, sublane-padded 4 -> 8).
# Double-buffered total ~2x this, kept under the explicit 32 MiB VMEM limit.
_VMEM_SET_BUDGET = 8 * 1024 * 1024


def _coeff_map(w1, w2, L):
    """A[c, j] such that sum(conv2(conv1(x))) == sum_{b,c,j} x[b,c,j] * A[c,j]."""
    K1 = w1.shape[-1]
    K2 = w2.shape[-1]
    L1 = L - K1 + 1
    L2 = L1 - K2 + 1

    # Output channels of conv2 are summed anyway -> collapse them first.
    w2s = jnp.sum(w2, axis=0)  # (C_MID, K2)

    # Coupled kernel g[c, t] = sum_{m, k1 + k2 = t} w2s[m, k2] * w1[m, c, k1].
    T = K1 + K2 - 1
    g = jnp.zeros((w1.shape[1], T), jnp.float32)
    for k1 in range(K1):  # static, tiny (K1 = 4)
        g = g.at[:, k1:k1 + K2].add(jnp.einsum("mc,mk->ck", w1[:, :, k1], w2s))

    # A[c, :] = full convolution of g[c, :] with ones(L2) -> length T + L2 - 1 == L.
    ones = jnp.ones((L2,), jnp.float32)
    a = jax.vmap(lambda gc: jnp.convolve(gc, ones, mode="full"))(g)
    return a.astype(jnp.float32)  # (C_IN, L)


def _make_kernel(L, tile_l):
    """Kernel: accumulate sum(x_tile * A_tile) into a per-split output block."""

    def kernel(x_ref, a_ref, out_ref):
        p = pl.program_id(0)          # megacore split index
        i = pl.program_id(1)          # length-tile index within the split

        @pl.when(i == 0)
        def _():
            out_ref[...] = jnp.zeros_like(out_ref)

        # Lane mask for the ragged last tile (OOB block contents unspecified).
        start = (p * pl.num_programs(1) + i) * tile_l
        lane = jax.lax.broadcasted_iota(jnp.int32, (1, 1, tile_l), 2)
        valid = (start + lane) < L

        # (B, C, tile_l) * (C, tile_l)  -- A broadcasts over the batch dim.
        prod = jnp.where(valid, x_ref[...] * a_ref[...], 0.0)
        partial = jnp.sum(prod, keepdims=True).reshape(1, 1)
        out_ref[...] += jnp.broadcast_to(partial, out_ref.shape)

    return kernel


@jax.jit
def fused_forward(x, w1, w2):
    """x: (B, 4, L) f32, w1: (8, 4, 4) f32, w2: (4, 8, 4) f32 -> scalar f32."""
    B, C, L = x.shape
    a = _coeff_map(w1, w2, L)  # (C_IN, L), tiny precompute in the wrapper

    # ---- tile sizing (length axis) ----------------------------------------
    l_lanes = pl.cdiv(L, LANE) * LANE
    # VMEM bytes per lane column: x rows (B batches, C=4 padded to 8 sublanes)
    # plus A rows (4 padded to 8), f32.  (For very large B the block simply
    # shrinks to the 128-lane minimum; rows are not blocked.)
    per_lane_bytes = (B + 1) * 8 * 4
    max_tile = max(LANE, (_VMEM_SET_BUDGET // per_lane_bytes) // LANE * LANE)
    tile_l = min(l_lanes, max_tile)

    num_tiles = pl.cdiv(L, tile_l)
    # Megacore split over the length range (v7x has 2 TensorCores); only when
    # the tile count divides evenly so no block is ever fully out of bounds.
    nsplits = 2 if (num_tiles >= 2 and num_tiles % 2 == 0) else 1
    tps = num_tiles // nsplits  # tiles per split

    kernel = _make_kernel(L, tile_l)
    out = pl.pallas_call(
        kernel,
        out_shape=jax.ShapeDtypeStruct((nsplits * 8, LANE), jnp.float32),
        grid=(nsplits, tps),
        in_specs=[
            pl.BlockSpec((B, C, tile_l), lambda p, i: (0, 0, p * tps + i)),
            pl.BlockSpec((C, tile_l), lambda p, i: (0, p * tps + i)),
        ],
        out_specs=pl.BlockSpec((8, LANE), lambda p, i: (p, 0)),
        compiler_params=pltpu.CompilerParams(
            dimension_semantics=("parallel", "arbitrary"),
            vmem_limit_bytes=32 * 1024 * 1024,
        ),
    )(x, a)
    # Every element of a split's (8, 128) block holds that split's full sum.
    return jnp.sum(out[0::8, 0])


def reference_forward(x, w1, w2):
    """Pure-JAX reference (lax conv) for a correctness check."""
    y1 = jax.lax.conv_general_dilated(
        x, w1, window_strides=(1,), padding="VALID",
        dimension_numbers=("NCH", "OIH", "NCH"))
    y2 = jax.lax.conv_general_dilated(
        y1, w2, window_strides=(1,), padding="VALID",
        dimension_numbers=("NCH", "OIH", "NCH"))
    return jnp.sum(y2)


if __name__ == "__main__":
    key = jax.random.PRNGKey(0)
    k_x, k_w1, k_w2 = jax.random.split(key, 3)

    B, L = 2, 16  # small shapes: (batch=2, channels=4, length=16)
    x = jax.random.normal(k_x, (B, C_IN, L), dtype=jnp.float32)

    # Deterministic weight init (kaiming-uniform-like bound as in torch Conv1d)
    bound1 = 1.0 / (C_IN * K) ** 0.5
    bound2 = 1.0 / (C_MID * K) ** 0.5
    w1 = jax.random.uniform(k_w1, (C_MID, C_IN, K), jnp.float32, -bound1, bound1)
    w2 = jax.random.uniform(k_w2, (C_OUT, C_MID, K), jnp.float32, -bound2, bound2)

    out = jax.block_until_ready(fused_forward(x, w1, w2))
    ref = jax.block_until_ready(reference_forward(x, w1, w2))

    assert jnp.allclose(out, ref, rtol=1e-4, atol=1e-5), (out, ref)
    print("KERNEL_OK")
</pallas_src>

<mosaic_0001>
module attributes {stable_mosaic.version = 11 : i64} {
  func.func @kernel(%arg0: i32, %arg1: i32, %arg2: memref<2x4x128xf32, #tpu.memory_space<vmem>>, %arg3: memref<4x128xf32, #tpu.memory_space<vmem>>, %arg4: memref<8x128xf32, #tpu.memory_space<vmem>>) attributes {dimension_semantics = [#tpu.dimension_semantics<parallel>, #tpu.dimension_semantics<arbitrary>], iteration_bounds = array<i64: 1, 1>, scalar_prefetch = 0 : i64, scratch_operands = 0 : i64, tpu.core_type = #tpu.core_type<tc>, window_params = [{transform_indices = @transform_0, window_bounds = array<i64: 2, 4, 128>}, {transform_indices = @transform_1, window_bounds = array<i64: 4, 128>}, {transform_indices = @transform_2, window_bounds = array<i64: 8, 128>}]} {
    %c0_i32 = arith.constant 0 : i32
    %0 = arith.cmpi eq, %arg1, %c0_i32 : i32
    %1 = arith.extui %0 : i1 to i32
    %c0_i32_0 = arith.constant 0 : i32
    %2 = arith.cmpi ne, %1, %c0_i32_0 : i32
    scf.if %2 {
      %cst_10 = arith.constant 0.000000e+00 : f32
      %31 = vector.broadcast %cst_10 : f32 to vector<8x128xf32>
      %c0_11 = arith.constant 0 : index
      %c0_12 = arith.constant 0 : index
      %32 = vector.load %arg4[%c0_11, %c0_12] : memref<8x128xf32, #tpu.memory_space<vmem>>, vector<8x128xf32>
      tpu.vector_store %arg4[%c0_11, %c0_12], %31 {strides = array<i32>} : memref<8x128xf32, #tpu.memory_space<vmem>>, vector<8x128xf32>,
    } else {
    }
    %c1_i32 = arith.constant 1 : i32
    %3 = arith.muli %arg0, %c1_i32 : i32
    %4 = arith.addi %3, %arg1 : i32
    %c128_i32 = arith.constant 128 : i32
    %5 = arith.muli %4, %c128_i32 : i32
    %6 = tpu.iota {dimensions = array<i32: 2>} : vector<1x1x128xi32>
    %7 = vector.broadcast %5 : i32 to vector<1x1x128xi32>
    %8 = arith.addi %7, %6 : vector<1x1x128xi32>
    %c16_i32 = arith.constant 16 : i32
    %9 = vector.broadcast %c16_i32 : i32 to vector<1x1x128xi32>
    %10 = arith.cmpi slt, %8, %9 : vector<1x1x128xi32>
    %c0 = arith.constant 0 : index
    %c0_1 = arith.constant 0 : index
    %c0_2 = arith.constant 0 : index
    %11 = vector.load %arg2[%c0, %c0_1, %c0_2] : memref<2x4x128xf32, #tpu.memory_space<vmem>>, vector<2x4x128xf32>
    %c0_3 = arith.constant 0 : index
    %c0_4 = arith.constant 0 : index
    %12 = vector.load %arg3[%c0_3, %c0_4] : memref<4x128xf32, #tpu.memory_space<vmem>>, vector<4x128xf32>
    %13 = vector.shape_cast %12 : vector<4x128xf32> to vector<1x4x128xf32>
    %14 = vector.broadcast %13 : vector<1x4x128xf32> to vector<2x4x128xf32>
    %15 = arith.mulf %11, %14 : vector<2x4x128xf32>
    %cst = arith.constant 0.000000e+00 : f32
    %16 = vector.shape_cast %10 : vector<1x1x128xi1> to vector<1x1x128xi1>
    %17 = vector.broadcast %16 : vector<1x1x128xi1> to vector<2x4x128xi1>
    %18 = vector.broadcast %cst : f32 to vector<2x4x128xf32>
    %19 = arith.select %17, %15, %18 : vector<2x4x128xi1>, vector<2x4x128xf32>
    %20 = vector.shape_cast %19 : vector<2x4x128xf32> to vector<1x2x4x128xf32>
    %cst_5 = arith.constant dense<0.000000e+00> : vector<1xf32>
    %21 = vector.multi_reduction <add>, %20, %cst_5 [1, 2, 3] : vector<1x2x4x128xf32> to vector<1xf32>
    %22 = vector.shape_cast %21 : vector<1xf32> to vector<1x1x1x1xf32>
    %23 = vector.extract %22[0, 0, 0, 0] : f32 from vector<1x1x1x1xf32>
    %24 = vector.broadcast %23 : f32 to vector<1x1x1xf32>
    %25 = vector.shape_cast %24 : vector<1x1x1xf32> to vector<1x1xf32>
    %c0_6 = arith.constant 0 : index
    %c0_7 = arith.constant 0 : index
    %26 = vector.load %arg4[%c0_6, %c0_7] : memref<8x128xf32, #tpu.memory_space<vmem>>, vector<8x128xf32>
    %27 = vector.shape_cast %25 : vector<1x1xf32> to vector<1x1xf32>
    %28 = vector.broadcast %27 : vector<1x1xf32> to vector<8x128xf32>
    %29 = arith.addf %26, %28 : vector<8x128xf32>
    %c0_8 = arith.constant 0 : index
    %c0_9 = arith.constant 0 : index
    %30 = vector.load %arg4[%c0_8, %c0_9] : memref<8x128xf32, #tpu.memory_space<vmem>>, vector<8x128xf32>
    tpu.vector_store %arg4[%c0_8, %c0_9], %29 {strides = array<i32>} : memref<8x128xf32, #tpu.memory_space<vmem>>, vector<8x128xf32>,
    return
  }
  func.func @transform_0(%arg0: i32, %arg1: i32) -> (i32, i32, i32) {
    %c1_i32 = arith.constant 1 : i32
    %0 = arith.muli %arg0, %c1_i32 : i32
    %1 = arith.addi %0, %arg1 : i32
    %c0_i32 = arith.constant 0 : i32
    %c0_i32_0 = arith.constant 0 : i32
    %c0_i32_1 = arith.constant 0 : i32
    return %c0_i32, %c0_i32_0, %1 : i32, i32, i32
  }
  func.func @transform_1(%arg0: i32, %arg1: i32) -> (i32, i32) {
    %c1_i32 = arith.constant 1 : i32
    %0 = arith.muli %arg0, %c1_i32 : i32
    %1 = arith.addi %0, %arg1 : i32
    %c0_i32 = arith.constant 0 : i32
    %c0_i32_0 = arith.constant 0 : i32
    return %c0_i32, %1 : i32, i32
  }
  func.func @transform_2(%arg0: i32, %arg1: i32) -> (i32, i32) {
    %c0_i32 = arith.constant 0 : i32
    %c0_i32_0 = arith.constant 0 : i32
    return %arg0, %c0_i32 : i32, i32
  }
}

</mosaic_0001>

<bundles_post_ra>
// kernel: fused_forward.1
= control target key start
LH: loop header
LB: loop body
LE: loop exit
PB: predicated region body
PF: predicated region fallthrough
CT: control target
= control target key end

     0   :  { %v52_v0 = vlaneseq  ;;  %vm66_vm0 = vcmask 1043456   ;;  %s129_s0 = inlined_call_operand.vmem [shape: f32[2,4,16], index: 0, kind: input, shape index: {}]   ;;  %s130_s1 = inlined_call_operand.vmem [shape: f32[4,16], index: 1, kind: input, shape index: {}]   ;;  %s131_s2 = inlined_call_operand.vmem [shape: f32[8,128], index: 2, kind: output, shape index: {}]  }
   0x1   :  { %v57_v1 = vld [vmem:[%s129_s0] sm:$0xf]  ;;  %v58_v2 = vld [vmem:[%s129_s0 + $0x4] sm:$0xf] }
   0x2   :  { %v59_v3 = vld [vmem:[%s130_s1] sm:$0xf]  ;;  %v53_v4 = vand.u32 127, %v52_v0 }
   0x3   :  { %v60_v5 = vmul.f32 %v59_v3, %v57_v1  ;;  %v61_v6 = vmul.f32 %v59_v3, %v58_v2 }
   0x4   :  { %vm56_vm1 = vcmp.lt.s32.totalorder %v53_v4, 16 }
   0x5   :  { %v64_v7 = vsel %vm56_vm1, %v60_v5, 0.0  ;;  %v65_v8 = vsel %vm56_vm1, %v61_v6, 0.0 }
   0x6   :  { %v67_v9 = vsel %vm66_vm0, %v64_v7, 0.0  ;;  %v68_v10 = vsel %vm66_vm0, %v65_v8, 0.0 }
   0x7   :  { %v69_v11 = vadd.f32 %v68_v10, %v67_v9 }
   0x9   :  { %70 = vadd.xlane.f32.xlu0 %v69_v11 }
  0x96   :  { %v71_v12 = vpop.xlane.xlu0 %70 }
  0x97   :  { %v72_v13 = vrot.slane %v71_v12, 4 }
  0x99   :  { %v73_v14 = vadd.f32 %v72_v13, %v71_v12 }
  0x9b   :  { %v74_v15 = vrot.slane %v73_v14, 2 }
  0x9d   :  { %v75_v16 = vadd.f32 %v74_v15, %v73_v14 }
  0x9f   :  { %v76_v17 = vrot.slane %v75_v16, 1 }
  0xa1   :  { %v77_v18 = vadd.f32 %v76_v17, %v75_v16 }
  0xa3   :  { %99 = vpush %v77_v18 }
  0xd4   :  { %s100_s0 = spop %99 }
  0xd5   :  { %v80_v19 = vstv %s100_s0 }
  0xd6   :  { %82 = vst [vmem:[%s131_s2] sm:$0xff] %v80_v19 }

</bundles_post_ra>
